<compile_context>
chip_gen: v5e
topology: v5e:2x2
jax: 0.10.0
libtpu: 0.0.40
codegen_flags: <defaults>
</compile_context>

<pallas_src>
import functools

import jax
import jax.numpy as jnp
import numpy as np
from jax import lax
from jax.experimental import pallas as pl
from jax.experimental.pallas import tpu as pltpu


def _bilinear_matrix(out_size, in_size):
    """(out_size, in_size) single-axis interpolation matrix identical to
    F.interpolate(mode='bilinear', align_corners=False) / jax.image.resize
    (half-pixel centers), built by resizing an identity."""
    eye = jnp.eye(in_size, dtype=jnp.float32)
    return jax.image.resize(eye, (out_size, in_size), method="bilinear")


def _vmem_capacity_bytes():
    """Per-core VMEM capacity; conservative 64 MiB (v7x) fallback if the query fails."""
    try:
        cap = int(getattr(pltpu.get_tpu_info(), "vmem_capacity_bytes", 0))
        if cap > 0:
            return cap
    except Exception:
        pass
    return 64 * 1024 * 1024


def _pick_row_tile(H, Q, W, h, w, num_id, itemsize, vmem_cap):
    """Largest multiple-of-8 divisor of H whose per-step footprint stays within ~35%
    of this generation's VMEM (128 MiB on v5e/v6e, 64 MiB on v7x), leaving room for
    double-buffered inputs, live values and compiler scratch."""
    if H <= 8 or H % 8 != 0:
        return H
    fixed = (2 * Q * h * w * itemsize          # low-res mask block (double-buffered)
             + 2 * w * W * itemsize            # column-interp weights
             + 2 * Q * num_id * itemsize)      # class probabilities
    per_row = (Q * W * itemsize                # sigmoid-mask scratch
               + 2 * W * 4                     # ood rows (double-buffered)
               + (num_id + 8) * W * 4)         # seg / score / hinge live values
    budget_rows = max(8, (max(0, int(0.35 * vmem_cap) - fixed)) // max(per_row, 1))
    tile, cand = 8, 16
    while cand <= H:
        if H % cand == 0 and cand <= budget_rows:
            tile = cand
        cand += 8
    return tile


def _contrastive_loss_kernel(p_ref, low_ref, wh_ref, wwT_ref, ood_ref,
                             out_ref, masks_scr, *, margin):
    """One (batch b, row-tile t) grid step.

    p_ref    : (Q, C)       softmax probs for the C id classes (hoisted to wrapper)
    low_ref  : (Q, h, w)    low-res mask logits
    wh_ref   : (TH, h)      bilinear row-interp weights for this row tile
    wwT_ref  : (w, W)       bilinear column-interp weights (transposed)
    ood_ref  : (TH, W)      ood mask rows for this tile (f32, {0,1})
    out_ref  : (1,1,1,4)    partials [sum(id_score^2), #id, sum(hinge^2), #ood]
    masks_scr: (Q, TH, W)   scratch for sigmoid(upsampled logits) (bf16 default)
    """
    Q, h, w = low_ref.shape
    TH = wh_ref.shape[0]
    W = wwT_ref.shape[1]
    mdt = masks_scr.dtype

    wh_t = wh_ref[...]                                     # (TH, h)
    wwT = wwT_ref[...]                                     # (w, W)

    # Fused separable bilinear upsample + cheap sigmoid, one query at a time.
    # pl.loop keeps code size bounded at production Q (~100) instead of Python unroll.
    @pl.loop(0, Q)
    def _(q):
        low_q = low_ref[q]                                             # (h, w)
        rows = jnp.dot(wh_t, low_q, preferred_element_type=jnp.float32)     # (TH, w)
        up = jnp.dot(rows.astype(wwT.dtype), wwT,
                     preferred_element_type=jnp.float32)               # (TH, W)
        # sigmoid(x) == 0.5 * (1 + tanh(x/2)) -> one EUP transcendental (no exp+div).
        x = (up * 0.5).astype(mdt)
        sig = (jnp.tanh(x) + 1.0) * 0.5
        masks_scr[q] = sig.astype(mdt)

    # One MXU contraction over the query axis for the whole tile (replaces the per-row
    # loop of tiny matmuls + accumulators): (Q,C) x (Q,TH*W) -> (C, TH*W).
    p = p_ref[...]                                         # (Q, C)
    masks2d = masks_scr[...].reshape(Q, TH * W)            # (Q, TH*W)
    dn = (((0,), (0,)), ((), ()))                          # contract query axis of both
    seg = lax.dot_general(p, masks2d, dn,
                          preferred_element_type=jnp.float32)          # (C, TH*W)
    score = -jnp.max(seg, axis=0, keepdims=True)           # (1, TH*W)

    ood = ood_ref[...].reshape(1, TH * W)                  # (1, TH*W)
    # Explicit compares (reference semantics): non-{0,1} ignore values join neither term.
    is_ood = (ood == 1.0).astype(jnp.float32)
    is_id = (ood == 0.0).astype(jnp.float32)
    hinge = jnp.maximum(margin - score, 0.0)

    partial = jnp.concatenate(
        [jnp.sum(score * score * is_id, axis=-1, keepdims=True),
         jnp.sum(is_id, axis=-1, keepdims=True),
         jnp.sum(hinge * hinge * is_ood, axis=-1, keepdims=True),
         jnp.sum(is_ood, axis=-1, keepdims=True)],
        axis=-1)                                           # (1, 4)
    out_ref[...] = partial.reshape(1, 1, 1, 4)


def contrastive_loss(cls_scores, mask_preds, ood_mask, *, margin=0.75,
                     loss_weight=1.0, num_id_classes=19, row_tile=None,
                     compute_dtype=jnp.bfloat16):
    """Pallas implementation of ContrastiveLoss.forward (reduction='mean').

    compute_dtype: bf16 (default) streams/feeds the MXU and stores the sigmoid scratch
    in bf16 with f32 accumulation; pass jnp.float32 for bit-tight validation.
    """
    B, Q, K = cls_scores.shape
    _, _, h, w = mask_preds.shape
    H, W = ood_mask.shape[-2:]
    assert num_id_classes < K
    assert mask_preds.shape[0] == B and ood_mask.shape[0] == B
    assert H >= h and W >= w, "fused bilinear weights match F.interpolate for upsampling only"

    cdt = jnp.dtype(compute_dtype)
    itemsize = cdt.itemsize
    vmem_cap = _vmem_capacity_bytes()
    TH = (_pick_row_tile(H, Q, W, h, w, num_id_classes, itemsize, vmem_cap)
          if row_tile is None else int(row_tile))
    assert H % TH == 0, f"row_tile={TH} must divide H={H}"
    assert TH == H or TH % 8 == 0, "row_tile must be a multiple of 8 (sublane tiling)"
    n_tiles = H // TH

    # Separable bilinear interpolation weights (match F.interpolate align_corners=False).
    wh = _bilinear_matrix(H, h).astype(cdt)                # (H, h)
    wwT = jnp.transpose(_bilinear_matrix(W, w)).astype(cdt)  # (w, W)

    # Softmax hoisted out of the kernel: done once per forward instead of per grid step.
    p_id = jax.nn.softmax(cls_scores.astype(jnp.float32),
                          axis=-1)[..., :num_id_classes].astype(cdt)   # (B, Q, 19)
    low = mask_preds.astype(cdt)                            # dominant HBM stream
    ood = ood_mask.reshape(B, H, W).astype(jnp.float32)

    kernel = functools.partial(_contrastive_loss_kernel, margin=float(margin))

    # Generation-aware VMEM limit: actual need with headroom, never the whole chip.
    est = (2 * (Q * num_id_classes + Q * h * w + TH * h + w * W) * itemsize
           + 2 * TH * W * 4 + Q * TH * W * itemsize
           + (num_id_classes + 16) * TH * W * 4 + 2 * 4 * 4)
    vmem_limit = int(min(0.75 * vmem_cap, max(2 * est, 32 * 1024 * 1024)))

    cost = pl.CostEstimate(
        flops=int(2 * B * Q * (H * w * h + H * W * w + num_id_classes * H * W)),
        transcendentals=int(B * Q * H * W),
        bytes_accessed=int(B * Q * (num_id_classes + h * w) * itemsize
                           + (H * h + w * W) * itemsize
                           + B * H * W * 4 + B * n_tiles * 4 * 4),
    )

    # TODO(synk): for very large Q*TH*W the (Q,TH,W) scratch could be replaced by a
    # (num_id,TH,W) seg accumulator updated over query chunks (review item 8).
    partials = pl.pallas_call(
        kernel,
        out_shape=jax.ShapeDtypeStruct((B, n_tiles, 1, 4), jnp.float32),
        grid_spec=pltpu.PrefetchScalarGridSpec(
            num_scalar_prefetch=0,
            grid=(B, n_tiles),
            in_specs=[
                pl.BlockSpec((None, Q, num_id_classes), lambda b, t: (b, 0, 0)),
                pl.BlockSpec((None, Q, h, w), lambda b, t: (b, 0, 0, 0)),
                pl.BlockSpec((TH, h), lambda b, t: (t, 0)),
                pl.BlockSpec((w, W), lambda b, t: (0, 0)),
                pl.BlockSpec((None, TH, W), lambda b, t: (b, t, 0)),
            ],
            out_specs=pl.BlockSpec((1, 1, 1, 4), lambda b, t: (b, t, 0, 0)),
            scratch_shapes=[pltpu.VMEM((Q, TH, W), cdt)],
        ),
        compiler_params=pltpu.CompilerParams(
            dimension_semantics=("parallel", "parallel"),
            vmem_limit_bytes=vmem_limit,
        ),
        cost_estimate=cost,
    )(p_id, low, wh, wwT, ood)

    sums = jnp.sum(partials, axis=(0, 1, 2))               # (4,)
    sum_id, cnt_id, sum_ood, cnt_ood = sums[0], sums[1], sums[2], sums[3]

    # pow(id_score, 2).mean(); NaN if zero id pixels, same as torch .mean() of empty.
    loss = sum_id / cnt_id
    loss = loss + jnp.where(cnt_ood > 0.0,                  # if ood_mask.sum() > 0
                            sum_ood / jnp.maximum(cnt_ood, 1.0),
                            0.0)
    return loss_weight * loss


def contrastive_loss_ref(cls_scores, mask_preds, ood_mask, *, margin=0.75,
                         loss_weight=1.0, num_id_classes=19):
    """Pure-JAX reference mirroring the PyTorch forward."""
    B, Q, K = cls_scores.shape
    H, W = ood_mask.shape[-2:]
    mask_up = jax.image.resize(mask_preds.astype(jnp.float32),
                               (B, Q, H, W), method="bilinear")
    p = jax.nn.softmax(cls_scores.astype(jnp.float32), axis=-1)[..., :-1]
    m = jax.nn.sigmoid(mask_up)
    seg = jnp.einsum("bqc,bqhw->bchw", p, m)
    score = -jnp.max(seg[:, :num_id_classes], axis=1)       # (B, H, W)
    is_id = (ood_mask == 0).astype(jnp.float32)
    is_ood = (ood_mask == 1).astype(jnp.float32)
    loss = jnp.sum(score**2 * is_id) / jnp.sum(is_id)
    hinge = jnp.maximum(margin - score, 0.0)
    loss = loss + jnp.where(jnp.sum(is_ood) > 0,
                            jnp.sum(hinge**2 * is_ood) / jnp.maximum(jnp.sum(is_ood), 1.0),
                            0.0)
    return loss_weight * loss


if __name__ == "__main__":
    key = jax.random.PRNGKey(0)
    B, Q, NUM_CLASSES = 2, 8, 21       # 19 id classes + 1 ood class + 1 "no object"
    h, w = 8, 16                       # mask_preds resolution
    H, W = 16, 128                     # gt / ood_mask resolution (lane-friendly W)

    k1, k2 = jax.random.split(key, 2)
    cls_scores = jax.random.normal(k1, (B, Q, NUM_CLASSES), dtype=jnp.float32)
    mask_preds = jax.random.normal(k2, (B, Q, h, w), dtype=jnp.float32)

    # TODO(synk): batch_gt_instances parsing (labels == 19 mask selection) is host-side
    # data plumbing; we construct the resulting binary ood_mask directly here.
    ood_mask = jnp.zeros((B, H, W), dtype=jnp.float32)
    ood_mask = ood_mask.at[0, 4:10, 20:90].set(1.0)   # image 0 has an OOD region, image 1 none

    # 1) pure-f32 path with explicit row tiling (2 tiles/batch) -- tight check against
    #    the independent jax.image.resize reference.
    loss_f32 = contrastive_loss(cls_scores, mask_preds, ood_mask, margin=0.75,
                                loss_weight=1.0, row_tile=8,
                                compute_dtype=jnp.float32)
    loss_f32 = jax.block_until_ready(loss_f32)
    ref = contrastive_loss_ref(cls_scores, mask_preds, ood_mask,
                               margin=0.75, loss_weight=1.0)
    np.testing.assert_allclose(np.asarray(loss_f32), np.asarray(ref),
                               rtol=1e-4, atol=1e-6)

    # 2) default bf16 path (bf16 streams, bf16 MXU operands, bf16 sigmoid scratch,
    #    auto row tile) -- loose check against the f32 reference.
    loss_bf16 = contrastive_loss(cls_scores, mask_preds, ood_mask,
                                 margin=0.75, loss_weight=1.0)
    loss_bf16 = jax.block_until_ready(loss_bf16)
    np.testing.assert_allclose(np.asarray(loss_bf16), np.asarray(ref),
                               rtol=5e-2, atol=2e-3)

    print("KERNEL_OK")
</pallas_src>

<mosaic_0001>
module attributes {stable_mosaic.version = 11 : i64} {
  func.func @_contrastive_loss_kernel(%arg0: i32, %arg1: i32, %arg2: memref<1x8x19xf32, #tpu.memory_space<vmem>>, %arg3: memref<1x8x8x16xf32, #tpu.memory_space<vmem>>, %arg4: memref<8x8xf32, #tpu.memory_space<vmem>>, %arg5: memref<16x128xf32, #tpu.memory_space<vmem>>, %arg6: memref<1x8x128xf32, #tpu.memory_space<vmem>>, %arg7: memref<1x1x1x4xf32, #tpu.memory_space<vmem>>, %arg8: memref<8x8x128xf32, #tpu.memory_space<vmem>>) attributes {dimension_semantics = [#tpu.dimension_semantics<parallel>, #tpu.dimension_semantics<parallel>], iteration_bounds = array<i64: 2, 2>, scalar_prefetch = 0 : i64, scratch_operands = 1 : i64, tpu.core_type = #tpu.core_type<tc>, window_params = [{transform_indices = @transform_0, window_bounds = array<i64: 1, 8, 19>}, {transform_indices = @transform_1, window_bounds = array<i64: 1, 8, 8, 16>}, {transform_indices = @transform_2, window_bounds = array<i64: 8, 8>}, {pipeline_mode = #tpu.pipeline_mode<synchronous>, transform_indices = @transform_3, window_bounds = array<i64: 16, 128>}, {transform_indices = @transform_4, window_bounds = array<i64: 1, 8, 128>}, {transform_indices = @transform_5, window_bounds = array<i64: 1, 1, 1, 4>}]} {
    %c0 = arith.constant 0 : index
    %c0_0 = arith.constant 0 : index
    %0 = vector.load %arg4[%c0, %c0_0] : memref<8x8xf32, #tpu.memory_space<vmem>>, vector<8x8xf32>
    %c0_1 = arith.constant 0 : index
    %c0_2 = arith.constant 0 : index
    %1 = vector.load %arg5[%c0_1, %c0_2] : memref<16x128xf32, #tpu.memory_space<vmem>>, vector<16x128xf32>
    %c0_i32 = arith.constant 0 : i32
    %c8_i32 = arith.constant 8 : i32
    %2 = arith.addi %c0_i32, %c8_i32 : i32
    %c1_i32 = arith.constant 1 : i32
    scf.for %arg9 = %c0_i32 to %2 step %c1_i32  : i32 {
      %c1_i32_27 = arith.constant 1 : i32
      %42 = arith.muli %arg9, %c1_i32_27 : i32
      %c0_i32_28 = arith.constant 0 : i32
      %43 = arith.addi %c0_i32_28, %42 : i32
      %c0_29 = arith.constant 0 : index
      %44 = arith.index_cast %43 : i32 to index
      %c0_30 = arith.constant 0 : index
      %c0_31 = arith.constant 0 : index
      %45 = vector.load %arg3[%c0_29, %44, %c0_30, %c0_31] : memref<1x8x8x16xf32, #tpu.memory_space<vmem>>, vector<1x1x8x16xf32>
      %46 = vector.shape_cast %45 : vector<1x1x8x16xf32> to vector<8x16xf32>
      %cst_32 = arith.constant dense<0.000000e+00> : vector<8x16xf32>
      %47 = tpu.matmul %0, %46, %cst_32 {dimension_numbers = #tpu.dot_dimension_numbers<[1], [0], [0], [1], [0, 0, 1, 1], [], []>} : vector<8x8xf32>, vector<8x16xf32>, vector<8x16xf32> -> vector<8x16xf32>
      %cst_33 = arith.constant dense<0.000000e+00> : vector<8x128xf32>
      %48 = tpu.matmul %47, %1, %cst_33 {dimension_numbers = #tpu.dot_dimension_numbers<[1], [0], [0], [1], [0, 0, 1, 1], [], []>} : vector<8x16xf32>, vector<16x128xf32>, vector<8x128xf32> -> vector<8x128xf32>
      %cst_34 = arith.constant 5.000000e-01 : f32
      %49 = vector.broadcast %cst_34 : f32 to vector<8x128xf32>
      %50 = arith.mulf %48, %49 : vector<8x128xf32>
      %51 = math.tanh %50 : vector<8x128xf32>
      %cst_35 = arith.constant 1.000000e+00 : f32
      %52 = vector.broadcast %cst_35 : f32 to vector<8x128xf32>
      %53 = arith.addf %51, %52 : vector<8x128xf32>
      %cst_36 = arith.constant 5.000000e-01 : f32
      %54 = vector.broadcast %cst_36 : f32 to vector<8x128xf32>
      %55 = arith.mulf %53, %54 : vector<8x128xf32>
      %56 = arith.index_cast %43 : i32 to index
      %c0_37 = arith.constant 0 : index
      %c0_38 = arith.constant 0 : index
      %57 = vector.load %arg8[%56, %c0_37, %c0_38] : memref<8x8x128xf32, #tpu.memory_space<vmem>>, vector<1x8x128xf32>
      %58 = vector.shape_cast %57 : vector<1x8x128xf32> to vector<8x128xf32>
      %59 = vector.shape_cast %55 : vector<8x128xf32> to vector<1x8x128xf32>
      tpu.vector_store %arg8[%56, %c0_37, %c0_38], %59 {strides = array<i32>} : memref<8x8x128xf32, #tpu.memory_space<vmem>>, vector<1x8x128xf32>,
    }
    %c8_i32_3 = arith.constant 8 : i32
    %c0_4 = arith.constant 0 : index
    %c0_5 = arith.constant 0 : index
    %c0_6 = arith.constant 0 : index
    %3 = vector.load %arg2[%c0_4, %c0_5, %c0_6] : memref<1x8x19xf32, #tpu.memory_space<vmem>>, vector<1x8x19xf32>
    %4 = vector.shape_cast %3 : vector<1x8x19xf32> to vector<8x19xf32>
    %c0_7 = arith.constant 0 : index
    %c0_8 = arith.constant 0 : index
    %c0_9 = arith.constant 0 : index
    %5 = vector.load %arg8[%c0_7, %c0_8, %c0_9] : memref<8x8x128xf32, #tpu.memory_space<vmem>>, vector<8x8x128xf32>
    %6 = vector.shape_cast %5 : vector<8x8x128xf32> to vector<8x1024xf32>
    %cst = arith.constant dense<0.000000e+00> : vector<19x1024xf32>
    %7 = tpu.matmul %4, %6, %cst {dimension_numbers = #tpu.dot_dimension_numbers<[0], [0], [1], [1], [0, 1, 1, 1], [], []>} : vector<8x19xf32>, vector<8x1024xf32>, vector<19x1024xf32> -> vector<19x1024xf32>
    %cst_10 = arith.constant dense<0xFF800000> : vector<1024xf32>
    %8 = vector.multi_reduction <maximumf>, %7, %cst_10 [0] : vector<19x1024xf32> to vector<1024xf32>
    %9 = vector.shape_cast %8 : vector<1024xf32> to vector<1x1024xf32>
    %cst_11 = arith.constant 0.000000e+00 : f32
    %10 = vector.broadcast %cst_11 : f32 to vector<1x1024xf32>
    %11 = arith.subf %10, %9 : vector<1x1024xf32>
    %c0_12 = arith.constant 0 : index
    %c0_13 = arith.constant 0 : index
    %c0_14 = arith.constant 0 : index
    %12 = vector.load %arg6[%c0_12, %c0_13, %c0_14] : memref<1x8x128xf32, #tpu.memory_space<vmem>>, vector<1x8x128xf32>
    %13 = vector.shape_cast %12 : vector<1x8x128xf32> to vector<8x128xf32>
    %14 = vector.shape_cast %13 : vector<8x128xf32> to vector<1x1024xf32>
    %cst_15 = arith.constant 1.000000e+00 : f32
    %15 = vector.broadcast %cst_15 : f32 to vector<1x1024xf32>
    %16 = arith.cmpf oeq, %14, %15 : vector<1x1024xf32>
    %17 = arith.extui %16 : vector<1x1024xi1> to vector<1x1024xi32>
    %18 = arith.sitofp %17 : vector<1x1024xi32> to vector<1x1024xf32>
    %cst_16 = arith.constant 0.000000e+00 : f32
    %19 = vector.broadcast %cst_16 : f32 to vector<1x1024xf32>
    %20 = arith.cmpf oeq, %14, %19 : vector<1x1024xf32>
    %21 = arith.extui %20 : vector<1x1024xi1> to vector<1x1024xi32>
    %22 = arith.sitofp %21 : vector<1x1024xi32> to vector<1x1024xf32>
    %cst_17 = arith.constant 7.500000e-01 : f32
    %23 = vector.broadcast %cst_17 : f32 to vector<1x1024xf32>
    %24 = arith.subf %23, %11 : vector<1x1024xf32>
    %cst_18 = arith.constant 0.000000e+00 : f32
    %25 = vector.broadcast %cst_18 : f32 to vector<1x1024xf32>
    %26 = arith.maximumf %24, %25 : vector<1x1024xf32>
    %27 = arith.mulf %11, %11 : vector<1x1024xf32>
    %28 = arith.mulf %27, %22 : vector<1x1024xf32>
    %cst_19 = arith.constant dense<0.000000e+00> : vector<1xf32>
    %29 = vector.multi_reduction <add>, %28, %cst_19 [1] : vector<1x1024xf32> to vector<1xf32>
    %30 = vector.shape_cast %29 : vector<1xf32> to vector<1x1xf32>
    %cst_20 = arith.constant dense<0.000000e+00> : vector<1xf32>
    %31 = vector.multi_reduction <add>, %22, %cst_20 [1] : vector<1x1024xf32> to vector<1xf32>
    %32 = vector.shape_cast %31 : vector<1xf32> to vector<1x1xf32>
    %33 = arith.mulf %26, %26 : vector<1x1024xf32>
    %34 = arith.mulf %33, %18 : vector<1x1024xf32>
    %cst_21 = arith.constant dense<0.000000e+00> : vector<1xf32>
    %35 = vector.multi_reduction <add>, %34, %cst_21 [1] : vector<1x1024xf32> to vector<1xf32>
    %36 = vector.shape_cast %35 : vector<1xf32> to vector<1x1xf32>
    %cst_22 = arith.constant dense<0.000000e+00> : vector<1xf32>
    %37 = vector.multi_reduction <add>, %18, %cst_22 [1] : vector<1x1024xf32> to vector<1xf32>
    %38 = vector.shape_cast %37 : vector<1xf32> to vector<1x1xf32>
    %39 = tpu.concatenate %30, %32, %36, %38 in 1 : vector<1x1xf32>, vector<1x1xf32>, vector<1x1xf32>, vector<1x1xf32> -> vector<1x4xf32>
    %40 = vector.shape_cast %39 : vector<1x4xf32> to vector<1x1x1x4xf32>
    %c0_23 = arith.constant 0 : index
    %c0_24 = arith.constant 0 : index
    %c0_25 = arith.constant 0 : index
    %c0_26 = arith.constant 0 : index
    %41 = vector.load %arg7[%c0_23, %c0_24, %c0_25, %c0_26] : memref<1x1x1x4xf32, #tpu.memory_space<vmem>>, vector<1x1x1x4xf32>
    tpu.vector_store %arg7[%c0_23, %c0_24, %c0_25, %c0_26], %40 {strides = array<i32>} : memref<1x1x1x4xf32, #tpu.memory_space<vmem>>, vector<1x1x1x4xf32>,
    return
  }
  func.func @transform_0(%arg0: i32, %arg1: i32) -> (i32, i32, i32) {
    %c0_i32 = arith.constant 0 : i32
    %c0_i32_0 = arith.constant 0 : i32
    %c0_i32_1 = arith.constant 0 : i32
    return %arg0, %c0_i32, %c0_i32_0 : i32, i32, i32
  }
  func.func @transform_1(%arg0: i32, %arg1: i32) -> (i32, i32, i32, i32) {
    %c0_i32 = arith.constant 0 : i32
    %c0_i32_0 = arith.constant 0 : i32
    %c0_i32_1 = arith.constant 0 : i32
    %c0_i32_2 = arith.constant 0 : i32
    return %arg0, %c0_i32, %c0_i32_0, %c0_i32_1 : i32, i32, i32, i32
  }
  func.func @transform_2(%arg0: i32, %arg1: i32) -> (i32, i32) {
    %c0_i32 = arith.constant 0 : i32
    %c0_i32_0 = arith.constant 0 : i32
    return %arg1, %c0_i32 : i32, i32
  }
  func.func @transform_3(%arg0: i32, %arg1: i32) -> (i32, i32) {
    %c0_i32 = arith.constant 0 : i32
    %c0_i32_0 = arith.constant 0 : i32
    %c0_i32_1 = arith.constant 0 : i32
    return %c0_i32, %c0_i32_0 : i32, i32
  }
  func.func @transform_4(%arg0: i32, %arg1: i32) -> (i32, i32, i32) {
    %c0_i32 = arith.constant 0 : i32
    %c0_i32_0 = arith.constant 0 : i32
    return %arg0, %arg1, %c0_i32 : i32, i32, i32
  }
  func.func @transform_5(%arg0: i32, %arg1: i32) -> (i32, i32, i32, i32) {
    %c0_i32 = arith.constant 0 : i32
    %c0_i32_0 = arith.constant 0 : i32
    %c0_i32_1 = arith.constant 0 : i32
    return %arg0, %arg1, %c0_i32, %c0_i32_0 : i32, i32, i32, i32
  }
}

</mosaic_0001>

<bundles_post_ra>
// kernel: tpu_custom_call.1
= control target key start
LH: loop header
LB: loop body
LE: loop exit
PB: predicated region body
PF: predicated region fallthrough
CT: control target
= control target key end

     0   :  { %s2167_s0 = inlined_call_operand.vmem [shape: f32[2,8,19], index: 0, kind: input, shape index: {}]   ;;  %s2168_s1 = inlined_call_operand.hbm [shape: f32[2,8,8,16], index: 1, kind: input, shape index: {}]   ;;  %s2169_s2 = inlined_call_operand.vmem [shape: f32[16,8], index: 2, kind: input, shape index: {}]   ;;  %s2170_s3 = inlined_call_operand.hbm [shape: f32[16,128], index: 3, kind: input, shape index: {}]   ;;  %s2171_s4 = inlined_call_operand.hbm [shape: f32[2,16,128], index: 4, kind: input, shape index: {}]   ;;  %s2172_s5 = inlined_call_operand.hbm [shape: f32[2,2,1,4], index: 5, kind: output, shape index: {}]  }
   0x1   :  { %2183 = sst [smem:[#allocation21_spill]] %s2167_s0 }
   0x2   :  { %2184 = sst [smem:[#allocation22_spill]] %s2168_s1 }
   0x3   :  { %2185 = sst [smem:[#allocation23_spill]] %s2169_s2 }
   0x4   :  { %2186 = sst [smem:[#allocation24_spill]] %s2170_s3 }
   0x5   :  { %2187 = sst [smem:[#allocation25_spill]] %s2172_s5 }
   0x6   :  { %10 = vsyncpa [#allocation4], 0 }
   0x7   :  { %12 = vsyncpa [#allocation4 + $0x1], 0 }
   0x8   :  { %13 = vsyncpa [#allocation7], 0 }
   0x9   :  { %14 = vsyncpa [#allocation5], 0 }
   0xa   :  { %16 = vsyncpa [#allocation5 + $0x1], 0  ;;  %s1693_s18 = smov 0   ;;  %s1695_s19 = smov 0  }
   0xb   :  { %s1697_s20 = smov 0   ;;  %s1699_s21 = smov 0  }
   0xc   :  { %s1701_s22 = smov 0   ;;  %s1703_s23 = smov 0  }
   0xd   :  { %s1705_s24 = smov 0   ;;  %s1707_s25 = smov 0  }
   0xe   :  { %s1709_s26 = smov 0   ;;  %s1711_s27 = smov 0  }
   0xf   :  { %s1713_s28 = smov 0  }
  0x10 LB: > { %2188 = sst [smem:[#allocation14_spill]] %s1611_s18  ;;  %p74_p0 = scmp.ne.s32.totalorder %s1631_s23, %s1627_s22  ;;  %s1651_s28 = sphi %s1713_s28, %s22_s28   ;;  %s1647_s27 = sphi %s1711_s27, %s2228_s27   ;;  %s1643_s26 = sphi %s1709_s26, %s2227_s26   ;;  %s1639_s25 = sphi %s1707_s25, %s2226_s25   ;;  %s1635_s24 = sphi %s1705_s24, %s2225_s24   ;;  %s1631_s23 = sphi %s1703_s23, %s2224_s23   ;;  %s1627_s22 = sphi %s1701_s22, %s2223_s22   ;;  %s1623_s21 = sphi %s1699_s21, %s2222_s21   ;;  %s1619_s20 = sphi %s1697_s20, %s2221_s20   ;;  %s1615_s19 = sphi %s1695_s19, %s2220_s19   ;;  %s1611_s18 = sphi %s1693_s18, %s2219_s18  }
  0x11   : > { %2189 = sst [smem:[#allocation15_spill]] %s1635_s24  ;;  %p75_p1 = scmp.eq.s32.totalorder %s1651_s28, 0 }
  0x12   : > { %2190 = sst [smem:[#allocation16_spill]] %s1639_s25  ;;  %p80_p2 = scmp.ne.s32.totalorder %s1627_s22, %s1623_s21 }
  0x13   : > { %p76_p3 = por %p75_p1, %p74_p0  ;;  %p1320_p4 = scmp.lt.s32.totalorder %s1651_s28, 4 }
  0x14   : > { %s228_s30 = sand.u32 1, %s1651_s28   ;;  %s230_s6 = sand.u32 1, %s1631_s23  }
  0x15   : > { %s1228_s7 = sshll.u32 %s230_s6, 6  ;;  %s1293_s8 = sshll.u32 %s1647_s27, 6 }
  0x16   : > { %s2191_s1 = sld [smem:[#allocation22_spill]]  ;;  %s232_s13 = scalar_lea.vmem [#allocation3], %s1228_s7 }
  0x17   : > { %s240_s14 = sshll.u32 %s232_s13, 4  ;;  %p1309_p5 = pnand %p1320_p4, %p76_p3  ;;  %s241_s14 = int_to_ptr.vmem [resolvable:$true] %s240_s14 }
  0x18   : > { %s1765_s15 = scalar_lea.sflag [#allocation4], %s228_s30  ;;  %s1657_s16 = smov 128  }
  0x19   : > { %s1658_s17 = smov 8   ;;  %s1769_s6 = sadd.s32 4294967295, %s1651_s28  }
  0x1a   : > { %p1225_p6 = scmp.ge.s32.totalorder %s1651_s28, 1  ;;  %p2173_p7 = scmp.eq.s32.totalorder %s1769_s6, 0 }
  0x1b   : > { %p194_p8 = scmp.lt.s32.totalorder %s1651_s28, 5  ;;  %s2192_s3 = sld [smem:[#allocation24_spill]] }
  0x1c   : > { %s237_s11 = scalar_lea.hbm %s2191_s1, %s1293_s8  ;;  %p1782_p9 = por %p2173_p7, %p80_p2 }
  0x1d   : > { %s238_s12 = sshll.u32 %s237_s11, 4  ;;  %p1786_p10 = pnand %p1225_p6, %p194_p8  ;;  %s239_s12 = int_to_ptr.hbm [resolvable:$true] %s238_s12 }
  0x1e   : > { %1311 = dma.hbm_to_vmem [thread:$0]  (!%p1309_p5), %s239_s12, 1024, %s241_s14, %s1765_s15, %s1657_s16, %s1657_s16, %s1658_s17  }
  0x1f   : > { %p1304_p11 = pneg %p1786_p10  ;;  %s1659_s11 = smov [#allocation6]  }
  0x20   : > { %s207_s21 = sshll.u32 %s1659_s11, 4  ;;  %s1224_s12 = sadd.s32 4294967294, %s1651_s28   ;;  %s208_s21 = int_to_ptr.vmem [resolvable:$true] %s207_s21 }
  0x21   : > { %s205_s30 = sshll.u32 %s2192_s3, 4  ;;  %p1305_p12 = pnand %p1304_p11, %p2173_p7  ;;  %s206_s30 = int_to_ptr.hbm [resolvable:$true] %s205_s30 }
  0x22   : > { %s31_s13 = sadd.s32 1, %s1643_s26  ;;  %s34_s14 = sadd.s32 1, %s1647_s27 }
  0x23   : > { %1307 = dma.hbm_to_vmem [thread:$0]  (!%p1305_p12), %s206_s30, 256, %s208_s21, [#allocation7], %s1657_s16, %s1657_s16, %s1658_s17  }
  0x24   : > { %p32_p13 = scmp.ge.s32.totalorder %s31_s13, 2  ;;  %s142_s7 = sadd.s32 1, %s1619_s20 }
  0x25   : > { %p149_p0 = scmp.ne.s32.totalorder %s1619_s20, %s1615_s19  ;;  %p155_p2 = scmp.ne.s32.totalorder %s1615_s19, %s1611_s18 }
  0x26   : > { %s2230_s13 = smov (%p32_p13, %s31_s13), 0  ;;  %s2232_s14 = smov (!%p32_p13, %s34_s14), %s1647_s27 }
  0x27   : > { %2195 = sst [smem:[#allocation17_spill]] %s2230_s13  ;;  %s138_s8 = ssub.s32 %s1643_s26, %s2230_s13 }
  0x28   : > { %p1809_p3 = por %p149_p0, %p75_p1  ;;  %p36_p5 = scmp.ge.s32.totalorder %s2232_s14, 2 }
  0x29   : > { %p1815_p6 = por %p155_p2, %p2173_p7  ;;  %p181_p8 = scmp.eq.s32.totalorder %s1769_s6, 3 }
  0x2a   : > { %p187_p11 = scmp.eq.s32.totalorder %s1224_s12, 3  ;;  %s2234_s14 = smov (%p36_p5, %s2232_s14), 0 }
  0x2b   : > { %2198 = sst [smem:[#allocation18_spill]] %s2234_s14  ;;  %p1822_p12 = por %p181_p8, %p149_p0 }
  0x2c   : > { %p1826_p1 = por %p187_p11, %p155_p2  ;;  %s64_s21 = ssub.s32 %s1647_s27, %s2234_s14 }
  0x2d   : > { %s2199_s30 = scalar_select %p1822_p12, 1, 0 }
  0x2e   : > { %s2201_s11 = scalar_select %p1826_p1, 1, 0 }
  0x2f   : > { %2200 = sst [smem:[#allocation19_spill]] %s2199_s30  ;;  %s259_s29 = sand.u32 1, %s1619_s20  }
  0x30   : > { %2202 = sst [smem:[#allocation20_spill]] %s2201_s11  ;;  %p65_p13 = scmp.eq.s32.totalorder %s64_s21, 0 }
  0x31   : > { %s139_s1 = sor.u32 %s138_s8, %s64_s21  ;;  %s1231_s12 = sshll.u32 %s259_s29, 3 }
  0x32   : > { %p140_p7 = scmp.eq.s32.totalorder %s139_s1, 0  ;;  %s2203_s3 = sadd.s32 1, %s1631_s23 }
  0x33   : > { %s1836_s13 = scalar_select %p65_p13, %s1631_s23, %s2203_s3  }
  0x34   : > { %s1839_s18 = scalar_select %p140_p7, %s1619_s20, %s142_s7  }
  0x35   : > { %s1232_s5 = sshll.u32 %s1647_s27, 1  ;;  %s261_s0 = scalar_lea.vmem [#allocation8], %s1231_s12 }
  0x36   : > { %s265_s30 = sadd.s32 %s1643_s26, %s1232_s5  ;;  %s271_s2 = sshll.u32 %s261_s0, 4  ;;  %s272_s2 = int_to_ptr.vmem [resolvable:$true] %s271_s2 }
  0x37   : > { %s1233_s25 = sshll.u32 %s265_s30, 3  ;;  %p1312_p0 = pnand %p1320_p4, %p1809_p3 }
  0x38   : > { %s267_s14 = scalar_lea.hbm %s2171_s4, %s1233_s25  ;;  %280 = sbr.rel (%p1786_p10) target bundleno = 700 (0x2bc), region = 40 }
  0x39   : > { %s269_s1 = sshll.u32 %s267_s14, 4  ;;  %s282_s3 = sand.u32 (!%p1786_p10), 1, %s1769_s6   ;;  %s270_s1 = int_to_ptr.hbm [resolvable:$true] %s269_s1 }
  0x3a   : > { %1314 = dma.hbm_to_vmem [thread:$0]  (!%p1312_p0), %s270_s1, 128, %s272_s2, %s1765_s15  }
  0x3b   : > { %s284_s0 = sand.u32 (!%p1786_p10), 1, %s1627_s22   ;;  %s283_s29 = scalar_lea.sflag (!%p1786_p10), [#allocation4], %s282_s3 }
  0x3c   : > { %s1855_s5 = sshll.u32 (!%p1786_p10), %s284_s0, 6 }
  0x3d   : > { %s286_s24 = scalar_lea.vmem [#allocation3], %s1855_s5 }
  0x3e   : > { %1594 = dma.done.wait (%p1782_p9), %s283_s29, 1024  }
  0x3f   : > { %1596 = vsyncadd (%p1782_p9), %s283_s29, 4294966272  ;;  %p2204_p4 = scmp.eq.s32.totalorder %s1769_s6, 0 }
  0x41   : > { %1598 = dma.done.wait (%p2204_p4), [#allocation7], 256   ;;  %p2205_p7 = pmov %p2204_p4 }
  0x42   : > { %s1867_s2 = sand.u32 1, %s1615_s19  }
  0x43   : > { %1600 = vsyncadd (%p2205_p7), [#allocation7], 4294967040  ;;  %s1237_s25 = sshll.u32 %s1867_s2, 3 }
  0x44   : > { %s1870_s15 = scalar_lea.vmem [#allocation8], %s1237_s25 }
  0x45   : > { %1602 = dma.done.wait (%p1815_p6), %s283_s29, 128  }
  0x46   : > { %1604 = vsyncadd (%p1815_p6), %s283_s29, 4294967168  ;;  %s2206_s9 = sld [smem:[#allocation15_spill]]  ;;  %v350_v1 = vld [vmem:[#allocation6] sm:$0xff]  ;;  %v351_v2 = vld [vmem:[#allocation6 + $0x8] sm:$0xff]  ;;  %s340_s1 = scalar_lea.vmem [#allocation9], %s1867_s2 }
  0x47   : > { %s2207_s10 = sld [smem:[#allocation16_spill]]  ;;  %s1653_s3 = smov 0  }
  0x48   : > { %s2208_s8 = sld [smem:[#allocation23_spill]] }
  0x49   : > { %s2209_s12 = sld [smem:[#allocation21_spill]] }
  0x4c   : > { %p345_p9 = scmp.lt.s32.totalorder %s2206_s9, 1 }
  0x4d   : > { %p341_p10 = scmp.lt.s32.totalorder %s2207_s10, 1 }
  0x4e   : > { %s2236_s9 = smov (!%p345_p9, %s2206_s9), 1 }
  0x4f   : > { %s2238_s10 = smov (!%p341_p10, %s2207_s10), 1  ;;  %s1239_s6 = sshll.u32 %s2236_s9, 3 }
  0x50   : > { %s348_s16 = scalar_lea.vmem %s2208_s8, %s1239_s6  ;;  %s1238_s30 = sshll.u32 %s2238_s10, 3 }
  0x51   : > { %s1886_s17 = scalar_lea.vmem %s2209_s12, %s1238_s30  ;;  %v349_v0 = vld [vmem:[%s348_s16] sm:$0xff] }
  0x52 LB: >> { %403 = vmatpush.msra.mxu1 %v351_v2  ;;  %s1240_s0 = sshll.u32 %s1655_s3, 3  ;;  %vm361_vm0 = vcmask 64512   ;;  %vm385_vm1 = vcmask 130048   ;;  %s357_s3 = sadd.s32 1, %s1655_s3   ;;  %s1655_s3 = sphi %s1653_s3, %s357_s3  }
  0x53   : >> { %s359_s29 = scalar_lea.vmem %s286_s24, %s1240_s0 [#allocation3]  ;;  %s413_s25 = scalar_lea.vmem [#allocation2], %s1240_s0 }
  0x54   : >> { %404 = vmatpush.msra.mxu1 %v350_v1  ;;  %v360_v3 = vld [vmem:[%s359_s29] sm:$0xff]  ;;  %p354_p2 = scmp.ge.s32.totalorder %s357_s3, 8  }
  0x55   : >> { %380 = vmatpush.msra.mxu0 %v360_v3  ;;  %v415_v10 = vld [vmem:[%s1886_s17] sm:$0xff] (%p354_p2)  ;;  %vm425_vm2 = vcmask (%p354_p2), 1047556   ;;  %v1660_v16 = vmov (%p354_p2), 1983009808   ;;  %v1661_v28 = vmov (%p354_p2), 1934713408  }
  0x56   : >> { %1241 = vmatmul.msk.f32.vlgmr.msra.gmra.mxu0 %vm361_vm0, %v349_v0  ;;  %537 = vxpose.xlu0.b32.start.end [1/1] (short) (narrow) (%p354_p2), %v415_v10, 24  ;;  %v430_v17 = vunpack.c.l.s4 (%p354_p2), %v1660_v16  ;;  %v478_v29 = vunpack.c.l.s4 (%p354_p2), %v1661_v28  ;;  %vm788_vm3 = vcmask (%p354_p2), 1042432   ;;  %vm971_vm8 = vcmask (%p354_p2), 1040384   ;;  %s2210_s5 = sld [smem:[#allocation16_spill]] (%p354_p2)  ;;  %s1077_s8 = sshll.u32 (%p354_p2), %s340_s1, 4  ;;  %s1078_s8 = int_to_ptr.vmem [resolvable:$true] %s1077_s8 }
  0x57   : > { %s2211_s24 = sld [smem:[#allocation15_spill]] (%p354_p2)  ;;  %s1065_s11 = scalar_lea.sflag (%p354_p2), [#allocation5], %s1867_s2 }
  0x58   : > { %v431_v23 = vunpack.c.0.s8 (%p354_p2), %v430_v17  ;;  %v479_v36 = vunpack.c.0.s8 (%p354_p2), %v478_v29  ;;  %s2212_s14 = sld [smem:[#allocation25_spill]] (%p354_p2) }
  0x5e   : > { %s1537_s0 = scalar_lea.hbm (%p354_p2), %s2212_s14, 4 }
  0xd3   : >> { %v382_v4 = vpop.f32.mrf.mxu0 }
  0xd4   : >> { %1242 = vmatmul.msk.f32.vlgmr.msra.gmra.mxu1 %vm385_vm1, %v382_v4 }
 0x151   : >> { %v406_v5 = vpop.f32.mrf.mxu1 }
 0x152   : >> { %v409_v6 = vmul.f32 0.5, %v406_v5 }
 0x154   : >> { %1425 = vtanh.f32 %v409_v6 }
 0x15a   : >> { %v1426_v7 = vpop.eup %1425 }
 0x15b   : >> { %v411_v8 = vadd.f32 1.0, %v1426_v7  ;;  %356 = sbr.rel (!%p354_p2) target bundleno = 82 (0x52), region = 122 }
 0x15d   : >> { %v412_v9 = vmul.f32 0.5, %v411_v8 }
 0x15f   : >> { %414 = vst [vmem:[%s413_s25] sm:$0xff] %v412_v9 }
 0x166   : > { %v416_v11 = vld [vmem:[#allocation2] sm:$0xff]  ;;  %v417_v12 = vld [vmem:[#allocation2 + $0x8] sm:$0xff]  ;;  %v418_v13 = vld [vmem:[#allocation2 + $0x10] sm:$0xff] }
 0x167   : > { %v419_v14 = vld [vmem:[#allocation2 + $0x18] sm:$0xff]  ;;  %v420_v15 = vld [vmem:[#allocation2 + $0x20] sm:$0xff]  ;;  %v421_v18 = vld [vmem:[#allocation2 + $0x28] sm:$0xff]  ;;  %v424_v21 = vrot.slane %v418_v13, 4  ;;  %v427_v57 = vrot.slane %v416_v11, 4  ;;  %v439_v60 = vrot.slane %v417_v12, 4 }
 0x168   : > { %v422_v19 = vld [vmem:[#allocation2 + $0x30] sm:$0xff]  ;;  %v423_v20 = vld [vmem:[#allocation2 + $0x38] sm:$0xff]  ;;  %v437_v22 = vrot.slane %v419_v14, 4  ;;  %v451_v58 = vrot.slane %v420_v15, 4  ;;  %v463_v62 = vrot.slane %v421_v18, 4 }
 0x169   : > { %v449_v24 = vrot.slane %v422_v19, 4  ;;  %v461_v25 = vrot.slane %v423_v20, 4  ;;  %v426_v26 = vsel %vm425_vm2, %v424_v21, %v416_v11  ;;  %v428_v59 = vsel %vm425_vm2, %v418_v13, %v427_v57 }
 0x16a   : > { %v438_v27 = vsel %vm425_vm2, %v437_v22, %v417_v12  ;;  %v432_v30 = vperm.slane %v426_v26, %v431_v23  ;;  %v452_v61 = vsel %vm425_vm2, %v422_v19, %v451_v58  ;;  %v436_v63 = vperm.slane %v428_v59, %v431_v23 }
 0x16b   : > { %v444_v31 = vperm.slane %v438_v27, %v431_v23  ;;  %v450_v32 = vsel %vm425_vm2, %v449_v24, %v420_v15  ;;  %v462_v33 = vsel %vm425_vm2, %v461_v25, %v421_v18  ;;  %v460_v0 = vperm.slane %v452_v61, %v431_v23  ;;  %v553_v25 = vpop.trf.xlu0 }
 0x16c   : > { %v456_v34 = vperm.slane %v450_v32, %v431_v23  ;;  %v468_v35 = vperm.slane %v462_v33, %v431_v23  ;;  %v475_v38 = vrot.slane %v432_v30, 4  ;;  %v440_v1 = vsel %vm425_vm2, %v419_v14, %v439_v60  ;;  %v1269_v60 = vld [vmem:[%s1870_s15 + $0x3] ss:$8 sm:$0x1] }
 0x16d   : > { %v473_v37 = vrot.slane %v444_v31, 4  ;;  %v464_v2 = vsel %vm425_vm2, %v423_v20, %v463_v62  ;;  %v448_v3 = vperm.slane %v440_v1, %v431_v23  ;;  %v487_v5 = vrot.slane %v436_v63, 4 }
 0x16e   : > { %v497_v39 = vrot.slane %v468_v35, 4  ;;  %v499_v40 = vrot.slane %v456_v34, 4  ;;  %v476_v42 = vsel %vm425_vm2, %v444_v31, %v475_v38  ;;  %v472_v4 = vperm.slane %v464_v2, %v431_v23 }
 0x16f   : > { %v474_v41 = vsel %vm425_vm2, %v473_v37, %v432_v30  ;;  %v484_v45 = vperm.slane %v476_v42, %v479_v36  ;;  %v511_v6 = vrot.slane %v460_v0, 4  ;;  %v488_v7 = vsel %vm425_vm2, %v448_v3, %v487_v5 }
 0x170   : > { %v480_v43 = vperm.slane %v474_v41, %v479_v36  ;;  %v498_v44 = vsel %vm425_vm2, %v497_v39, %v456_v34  ;;  %v500_v46 = vsel %vm425_vm2, %v468_v35, %v499_v40  ;;  %v485_v9 = vrot.slane %v448_v3, 4  ;;  %v1267_v41 = vld [vmem:[%s1870_s15 + $0x1] ss:$8 sm:$0x1] }
 0x171   : > { %v504_v47 = vperm.slane %v498_v44, %v479_v36  ;;  %v508_v48 = vperm.slane %v500_v46, %v479_v36  ;;  %v527_v50 = vrot.slane %v484_v45, 4  ;;  %v512_v8 = vsel %vm425_vm2, %v472_v4, %v511_v6 }
 0x172   : > { %v523_v49 = vrot.slane %v480_v43, 4  ;;  %v509_v10 = vrot.slane %v472_v4, 4  ;;  %v496_v11 = vperm.slane %v488_v7, %v479_v36  ;;  %v520_v12 = vperm.slane %v512_v8, %v479_v36 }
 0x173   : > { %v521_v51 = vrot.slane %v504_v47, 4  ;;  %v525_v52 = vrot.slane %v508_v48, 4  ;;  %v528_v54 = vsel %vm425_vm2, %v508_v48, %v527_v50  ;;  %v486_v13 = vsel %vm425_vm2, %v485_v9, %v436_v63  ;;  %v554_v26 = vpop.trf.xlu0  ;;  %v1268_v48 = vld [vmem:[%s1870_s15 + $0x2] ss:$8 sm:$0x1] }
 0x174   : > { %v524_v53 = vsel %vm425_vm2, %v504_v47, %v523_v49  ;;  %672 = vmatpush.msra.mxu3 %v528_v54  ;;  %v510_v15 = vsel %vm425_vm2, %v509_v10, %v460_v0  ;;  %v533_v16 = vrot.slane %v520_v12, 4  ;;  %v492_v14 = vperm.slane %v486_v13, %v479_v36 }
 0x175   : > { %v522_v55 = vsel %vm425_vm2, %v521_v51, %v480_v43  ;;  %620 = vmatpush.msra.mxu1 %v524_v53  ;;  %v526_v56 = vsel %vm425_vm2, %v525_v52, %v484_v45  ;;  %v516_v17 = vperm.slane %v510_v15, %v479_v36  ;;  %v535_v18 = vrot.slane %v496_v11, 4  ;;  %1252 = vmatmul.msk.f32.vlgmr.msra.gmra.mxu3 %vm361_vm0, %v553_v25  ;;  %v868_v36 = vld [vmem:[%s1870_s15] ss:$8 sm:$0x1] }
 0x176   : > { %594 = vmatpush.msra.mxu0 %v522_v55  ;;  %646 = vmatpush.msra.mxu2 %v526_v56  ;;  %v534_v19 = vsel %vm425_vm2, %v533_v16, %v496_v11  ;;  %v531_v22 = vrot.slane %v492_v14, 4  ;;  %vm891_vm4 = vcmp.eq.f32.partialorder %v868_v36, 1.0  ;;  %vm915_vm5 = vcmp.eq.f32.partialorder %v868_v36, 0.0 }
 0x177   : > { %v529_v20 = vrot.slane %v516_v17, 4  ;;  %v536_v21 = vsel %vm425_vm2, %v520_v12, %v535_v18  ;;  %1243 = vmatmul.msk.f32.vlgmr.msra.gmra.mxu0 %vm361_vm0, %v553_v25  ;;  %1246 = vmatmul.msk.f32.vlgmr.msra.gmra.mxu1 %vm361_vm0, %v553_v25  ;;  %vm916_vm6 = vcmp.eq.f32.partialorder %v1267_v41, 0.0  ;;  %vm892_vm7 = vcmp.eq.f32.partialorder %v1267_v41, 1.0  ;;  %v1974_v12 = vld [vmem:[%s1870_s15 + $0x4] ss:$8 sm:$0x1] }
 0x178   : > { %750 = vmatpush.msrb.mxu2 %v534_v19  ;;  %776 = vmatpush.msrb.mxu3 %v536_v21  ;;  %v532_v24 = vsel %vm425_vm2, %v516_v17, %v531_v22  ;;  %v1662_v49 = vmov 0.0   ;;  %vm917_vm9 = vcmp.eq.f32.partialorder %v1268_v48, 0.0  ;;  %vm893_vm10 = vcmp.eq.f32.partialorder %v1268_v48, 1.0 }
 0x179   : > { %v530_v23 = vsel %vm425_vm2, %v529_v20, %v492_v14  ;;  %724 = vmatpush.msrb.mxu1 %v532_v24  ;;  %1249 = vmatmul.msk.f32.vlgmr.msra.gmra.mxu2 %vm361_vm0, %v553_v25  ;;  %v1947_v50 = vsel %vm891_vm4, 1.0, %v1662_v49  ;;  %v1950_v51 = vsel %vm915_vm5, 1.0, %v1662_v49  ;;  %v1953_v54 = vsel %vm916_vm6, 1.0, %v1662_v49  ;;  %v1977_v14 = vld [vmem:[%s1870_s15 + $0x5] ss:$8 sm:$0x1] }
 0x17a   : > { %698 = vmatpush.msrb.mxu0 %v530_v23  ;;  %v1956_v57 = vsel %vm892_vm7, 1.0, %v1662_v49  ;;  %v989_v5 = vsel %vm971_vm8, %v1950_v51, 0.0  ;;  %v990_v6 = vsel %vm971_vm8, %v1953_v54, 0.0  ;;  %v1971_v9 = vsel %vm917_vm9, 1.0, %v1662_v49 }
 0x17b   : > { %v555_v27 = vpop.trf.xlu0  ;;  %vm918_vm11 = vcmp.eq.f32.partialorder %v1269_v60, 0.0  ;;  %v991_v13 = vadd.f32 %v990_v6, %v989_v5  ;;  %v992_v17 = vsel %vm971_vm8, %v1971_v9, 0.0  ;;  %v1982_v19 = vsel %vm893_vm10, 1.0, %v1662_v49 }
 0x17c   : > { %vm894_vm12 = vcmp.eq.f32.partialorder %v1269_v60, 1.0  ;;  %vm919_vm13 = vcmp.eq.f32.partialorder %v1974_v12, 0.0  ;;  %vm920_vm14 = vcmp.eq.f32.partialorder %v1977_v14, 0.0  ;;  %vm895_vm1 = vcmp.eq.f32.partialorder %v1974_v12, 1.0 }
 0x17d   : > { %1253 = vmatmul.msk.f32.gmra.mxu3 %vm361_vm0, %v554_v26  ;;  %vm896_vm2 = vcmp.eq.f32.partialorder %v1977_v14, 1.0  ;;  %vm1058_vm6 = vcmask 15360   ;;  %vm1060_vm7 = vcmask 23552  }
 0x17f   : > { %1244 = vmatmul.msk.f32.gmra.mxu0 %vm361_vm0, %v554_v26  ;;  %1247 = vmatmul.msk.f32.gmra.mxu1 %vm361_vm0, %v554_v26 }
 0x181   : > { %1250 = vmatmul.msk.f32.gmra.mxu2 %vm361_vm0, %v554_v26 }
 0x185   : > { %1254 = vmatmul.msk.f32.gmra.mxu3 %vm361_vm0, %v555_v27 }
 0x187   : > { %1245 = vmatmul.msk.f32.gmra.mxu0 %vm361_vm0, %v555_v27  ;;  %1248 = vmatmul.msk.f32.gmra.mxu1 %vm361_vm0, %v555_v27 }
 0x189   : > { %1251 = vmatmul.msk.f32.gmra.mxu2 %vm361_vm0, %v555_v27 }
 0x18d   : > { %1264 = vmatmul.msk.f32.vlgmr.msrb.gmra.mxu3 %vm361_vm0, %v553_v25 }
 0x18f   : > { %1255 = vmatmul.msk.f32.vlgmr.msrb.gmra.mxu0 %vm361_vm0, %v553_v25  ;;  %1258 = vmatmul.msk.f32.vlgmr.msrb.gmra.mxu1 %vm361_vm0, %v553_v25 }
 0x191   : > { %1261 = vmatmul.msk.f32.vlgmr.msrb.gmra.mxu2 %vm361_vm0, %v553_v25 }
 0x195   : > { %1265 = vmatmul.msk.f32.gmra.mxu3 %vm361_vm0, %v554_v26 }
 0x197   : > { %1256 = vmatmul.msk.f32.gmra.mxu0 %vm361_vm0, %v554_v26  ;;  %1259 = vmatmul.msk.f32.gmra.mxu1 %vm361_vm0, %v554_v26 }
 0x199   : > { %1262 = vmatmul.msk.f32.gmra.mxu2 %vm361_vm0, %v554_v26 }
 0x19d   : > { %1266 = vmatmul.msk.f32.gmra.mxu3 %vm361_vm0, %v555_v27 }
 0x19f   : > { %1257 = vmatmul.msk.f32.gmra.mxu0 %vm361_vm0, %v555_v27  ;;  %1260 = vmatmul.msk.f32.gmra.mxu1 %vm361_vm0, %v555_v27 }
 0x1a1   : > { %1263 = vmatmul.msk.f32.gmra.mxu2 %vm361_vm0, %v555_v27  ;;  %v1992_v27 = vsel %vm918_vm11, 1.0, %v1662_v49 }
 0x1f4   : > { %v596_v28 = vpop.f32.mrf.mxu0  ;;  %v622_v29 = vpop.f32.mrf.mxu1 }
 0x1f8   : > { %v674_v31 = vpop.f32.mrf.mxu3 }
 0x1fc   : > { %v648_v30 = vpop.f32.mrf.mxu2  ;;  %v599_v32 = vpop.f32.mrf.mxu0 }
 0x1fd   : > { %v625_v33 = vpop.f32.mrf.mxu1  ;;  %v787_v37 = vmax.f32 %v596_v28, %v599_v32  ;;  %v993_v28 = vadd.f32 %v992_v17, %v991_v13 }
 0x1fe   : > { %v797_v38 = vmax.f32 %v622_v29, %v625_v33  ;;  %v994_v33 = vsel %vm971_vm8, %v1992_v27, 0.0 }
 0x1ff   : > { %v995_v48 = vadd.f32 %v994_v33, %v993_v28 }
 0x200   : > { %v677_v35 = vpop.f32.mrf.mxu3 }
 0x201   : > { %v815_v56 = vmax.f32 %v674_v31, %v677_v35 }
 0x204   : > { %v651_v34 = vpop.f32.mrf.mxu2  ;;  %v602_v39 = vpop.f32.mrf.mxu0 }
 0x205   : > { %v628_v40 = vpop.f32.mrf.mxu1  ;;  %v789_v42 = vsel %vm788_vm3, %v602_v39, -inf  ;;  %v806_v55 = vmax.f32 %v648_v30, %v651_v34  ;;  %v1998_v34 = vsel %vm894_vm12, 1.0, %v1662_v49  ;;  %v2011_v39 = vsel %vm920_vm14, 1.0, %v1662_v49 }
 0x206   : > { %v798_v43 = vsel %vm788_vm3, %v628_v40, -inf  ;;  %v790_v44 = vmax.f32 %v787_v37, %v789_v42  ;;  %v2001_v37 = vld [vmem:[%s1870_s15 + $0x6] ss:$8 sm:$0x1] }
 0x207   : > { %v799_v45 = vmax.f32 %v797_v38, %v798_v43  ;;  %v2006_v38 = vsel %vm919_vm13, 1.0, %v1662_v49  ;;  %vm921_vm15 = vcmp.eq.f32.partialorder %v2001_v37, 0.0  ;;  %vm897_vm4 = vcmp.eq.f32.partialorder %v2001_v37, 1.0 }
 0x208   : > { %v791_v46 = vrot.slane %v790_v44, 4  ;;  %v680_v59 = vpop.f32.mrf.mxu3 }
 0x209   : > { %v800_v47 = vrot.slane %v799_v45, 4  ;;  %v816_v0 = vsel %vm788_vm3, %v680_v59, -inf }
 0x20a   : > { %v792_v52 = vmax.f32 %v790_v44, %v791_v46  ;;  %v817_v4 = vmax.f32 %v815_v56, %v816_v0  ;;  %v2014_v44 = vld [vmem:[%s1870_s15 + $0x7] ss:$8 sm:$0x1]  ;;  %s1290_s15 = sshll.u32 %s2210_s5, 1 }
 0x20b   : > { %v801_v53 = vmax.f32 %v799_v45, %v800_v47  ;;  %vm922_vm0 = vcmp.eq.f32.partialorder %v2014_v44, 0.0  ;;  %vm898_vm5 = vcmp.eq.f32.partialorder %v2014_v44, 1.0  ;;  %s1074_s9 = sadd.s32 %s2211_s24, %s1290_s15 }
 0x20c   : > { %v654_v58 = vpop.f32.mrf.mxu2  ;;  %v793_v61 = vrot.slane %v792_v52, 2  ;;  %v1961_v1 = vpop.f32.mrf.mxu0  ;;  %v818_v11 = vrot.slane %v817_v4, 4  ;;  %s1075_s7 = scalar_lea.hbm %s2212_s14, %s1074_s9 }
 0x20d   : > { %v802_v62 = vrot.slane %v801_v53, 2  ;;  %v807_v63 = vsel %vm788_vm3, %v654_v58, -inf  ;;  %v1963_v2 = vpop.f32.mrf.mxu1  ;;  %s1079_s16 = sshll.u32 %s1075_s7, 4  ;;  %s1080_s16 = int_to_ptr.hbm [resolvable:$true] %s1079_s16 }
 0x20e   : > { %v808_v3 = vmax.f32 %v806_v55, %v807_v63  ;;  %v794_v7 = vmax.f32 %v792_v52, %v793_v61  ;;  %v819_v20 = vmax.f32 %v817_v4, %v818_v11  ;;  %s1531_s21 = sshra.s32 %s1080_s16, 4  ;;  %s1532_s21 = int_to_ptr.hbm [resolvable:$true] %s1531_s21 }
 0x20f   : > { %v803_v8 = vmax.f32 %v801_v53, %v802_v62  ;;  %s1533_s12 = scalar_lea.hbm %s1532_s21, 1  ;;  %p1538_p8 = scmp.lt.s32.totalorder %s1532_s21, %s2212_s14 }
 0x210   : > { %v809_v10 = vrot.slane %v808_v3, 4  ;;  %v795_v15 = vrot.slane %v794_v7, 1  ;;  %v820_v24 = vrot.slane %v819_v20, 2  ;;  %v1988_v26 = vpop.f32.mrf.mxu3  ;;  %p1534_p3 = scmp.ne.s32.totalorder %s1532_s21, %s1533_s12  ;;  %p1539_p11 = scmp.lt.s32.totalorder %s1537_s0, %s1533_s12 }
 0x211   : > { %v804_v16 = vrot.slane %v803_v8, 1 }
 0x212   : > { %v810_v18 = vmax.f32 %v808_v3, %v809_v10  ;;  %v796_v21 = vmax.f32 %v794_v7, %v795_v15  ;;  %v821_v36 = vmax.f32 %v819_v20, %v820_v24  ;;  %v2036_v10 = vsel %vm922_vm0, 1.0, %v1662_v49  ;;  %p1535_p5 = pnand %p1534_p3, %p1822_p12  ;;  %p1540_p13 = por %p1539_p11, %p1538_p8 }
 0x213   : > { %v805_v22 = vmax.f32 %v803_v8, %v804_v16  ;;  %v996_v20 = vsel %vm971_vm8, %v2006_v38, 0.0 }
 0x214   : > { %v811_v23 = vrot.slane %v810_v18, 2  ;;  %v1986_v25 = vpop.f32.mrf.mxu2  ;;  %v860_v29 = vsub.f32 0.0, %v796_v21  ;;  %v703_v31 = vpop.f32.mrf.mxu0  ;;  %v822_v46 = vrot.slane %v821_v36, 1  ;;  %v998_v21 = vsel %vm971_vm8, %v2011_v39, 0.0  ;;  %p1536_p6 = pneg %p1535_p5 }
 0x215   : > { %v861_v30 = vsub.f32 0.0, %v805_v22  ;;  %v729_v32 = vpop.f32.mrf.mxu1  ;;  %v824_v47 = vmax.f32 %v1961_v1, %v703_v31 }
 0x216   : > { %v812_v35 = vmax.f32 %v810_v18, %v811_v23  ;;  %v939_v40 = vsub.f32 0.75, %v860_v29  ;;  %v955_v41 = vmul.f32 %v860_v29, %v860_v29  ;;  %v823_v59 = vmax.f32 %v821_v36, %v822_v46  ;;  %p1541_p0 = pnand %p1540_p13, %p1536_p6 }
 0x217   : > { %v940_v42 = vsub.f32 0.75, %v861_v30  ;;  %v956_v43 = vmul.f32 %v861_v30, %v861_v30  ;;  %v833_v63 = vmax.f32 %v1963_v2, %v729_v32  ;;  %v997_v30 = vadd.f32 %v996_v20, %v995_v48 }
 0x218   : > { %v813_v45 = vrot.slane %v812_v35, 1  ;;  %v947_v52 = vmax.f32 %v939_v40, 0.0  ;;  %v963_v53 = vmul.f32 %v1950_v51, %v955_v41  ;;  %v863_v3 = vsub.f32 0.0, %v823_v59  ;;  %v781_v4 = vpop.f32.mrf.mxu3 }
 0x219   : > { %v948_v55 = vmax.f32 %v940_v42, 0.0  ;;  %v964_v56 = vmul.f32 %v1953_v54, %v956_v43  ;;  %v2027_v54 = vsel %vm921_vm15, 1.0, %v1662_v49  ;;  %v851_v28 = vmax.f32 %v1988_v26, %v781_v4 }
 0x21a   : > { %v814_v58 = vmax.f32 %v812_v35, %v813_v45  ;;  %v972_v60 = vsel %vm971_vm8, %v963_v53, 0.0  ;;  %v1006_v61 = vmul.f32 %v947_v52, %v947_v52  ;;  %v942_v15 = vsub.f32 0.75, %v863_v3 }
 0x21b   : > { %v1007_v62 = vmul.f32 %v948_v55, %v948_v55  ;;  %v973_v0 = vsel %vm971_vm8, %v964_v56, 0.0  ;;  %v958_v16 = vmul.f32 %v863_v3, %v863_v3  ;;  %v1000_v31 = vsel %vm971_vm8, %v2027_v54, 0.0 }
 0x21c   : > { %v862_v1 = vsub.f32 0.0, %v814_v58  ;;  %v755_v51 = vpop.f32.mrf.mxu2  ;;  %v1014_v5 = vmul.f32 %v1947_v50, %v1006_v61  ;;  %v706_v2 = vpop.f32.mrf.mxu0  ;;  %v950_v24 = vmax.f32 %v942_v15, 0.0  ;;  %v1002_v35 = vsel %vm971_vm8, %v2036_v10, 0.0 }
 0x21d   : > { %v1015_v6 = vmul.f32 %v1956_v57, %v1007_v62  ;;  %v842_v7 = vmax.f32 %v1986_v25, %v755_v51  ;;  %v732_v8 = vpop.f32.mrf.mxu1  ;;  %v825_v17 = vsel %vm788_vm3, %v706_v2, -inf  ;;  %v966_v36 = vmul.f32 %v1992_v27, %v958_v16 }
 0x21e   : > { %v941_v11 = vsub.f32 0.75, %v862_v1  ;;  %v957_v13 = vmul.f32 %v862_v1, %v862_v1  ;;  %v834_v18 = vsel %vm788_vm3, %v732_v8, -inf  ;;  %v826_v25 = vmax.f32 %v824_v47, %v825_v17 }
 0x21f   : > { %v835_v29 = vmax.f32 %v833_v63, %v834_v18  ;;  %v1009_v40 = vmul.f32 %v950_v24, %v950_v24  ;;  %v999_v42 = vadd.f32 %v998_v21, %v997_v30  ;;  %v974_v47 = vadd.f32 %v973_v0, %v972_v60 }
 0x220   : > { %v949_v22 = vmax.f32 %v941_v11, 0.0  ;;  %v965_v23 = vmul.f32 %v1971_v9, %v957_v13  ;;  %v827_v33 = vrot.slane %v826_v25, 4  ;;  %v784_v46 = vpop.f32.mrf.mxu3  ;;  %v977_v48 = vsel %vm971_vm8, %v966_v36, 0.0 }
 0x221   : > { %v836_v41 = vrot.slane %v835_v29, 4  ;;  %v852_v27 = vsel %vm788_vm3, %v784_v46, -inf  ;;  %v1001_v55 = vadd.f32 %v1000_v31, %v999_v42  ;;  %v2060_v1 = vsel %vm895_vm1, 1.0, %v1662_v49 }
 0x222   : > { %v1008_v32 = vmul.f32 %v949_v22, %v949_v22  ;;  %v975_v9 = vsel %vm971_vm8, %v965_v23, 0.0  ;;  %v828_v26 = vmax.f32 %v826_v25, %v827_v33  ;;  %v853_v59 = vmax.f32 %v851_v28, %v852_v27 }
 0x223   : > { %v837_v52 = vmax.f32 %v835_v29, %v836_v41  ;;  %v976_v61 = vadd.f32 %v975_v9, %v974_v47  ;;  %v1003_v63 = vadd.f32 %v1002_v35, %v1001_v55  ;;  %v2065_v60 = vsel %vm896_vm2, 1.0, %v1662_v49 }
 0x224   : > { %v1016_v43 = vmul.f32 %v1982_v19, %v1008_v32  ;;  %v758_v45 = vpop.f32.mrf.mxu2  ;;  %v829_v56 = vrot.slane %v828_v26, 2  ;;  %v854_v51 = vrot.slane %v853_v59, 4  ;;  %v2070_v4 = vsel %vm897_vm4, 1.0, %v1662_v49 }
 0x225   : > { %v843_v53 = vsel %vm788_vm3, %v758_v45, -inf  ;;  %v838_v62 = vrot.slane %v837_v52, 2  ;;  %1004 = vadd.xlane.f32.xlu1 %v1003_v63  ;;  %v978_v2 = vadd.f32 %v977_v48, %v976_v61  ;;  %v1017_v12 = vmul.f32 %v1998_v34, %v1009_v40 }
 0x226   : > { %v844_v58 = vmax.f32 %v842_v7, %v843_v53  ;;  %v830_v0 = vmax.f32 %v828_v26, %v829_v56  ;;  %v1022_v8 = vsel %vm971_vm8, %v1014_v5, 0.0  ;;  %v855_v14 = vmax.f32 %v853_v59, %v854_v51 }
 0x227   : > { %v839_v7 = vmax.f32 %v837_v52, %v838_v62  ;;  %v1023_v15 = vsel %vm971_vm8, %v1015_v6, 0.0  ;;  %v1025_v18 = vsel %vm971_vm8, %v1016_v43, 0.0  ;;  %v1027_v37 = vsel %vm971_vm8, %v1017_v12, 0.0 }
 0x228   : > { %v845_v3 = vrot.slane %v844_v58, 4  ;;  %v831_v11 = vrot.slane %v830_v0, 1  ;;  %v1024_v17 = vadd.f32 %v1023_v15, %v1022_v8  ;;  %v856_v22 = vrot.slane %v855_v14, 2 }
 0x229   : > { %v840_v16 = vrot.slane %v839_v7, 1  ;;  %v1039_v23 = vsel %vm971_vm8, %v1947_v50, 0.0  ;;  %v1040_v5 = vsel %vm971_vm8, %v1956_v57, 0.0  ;;  %v1042_v6 = vsel %vm971_vm8, %v1982_v19, 0.0 }
 0x22a   : > { %v846_v13 = vmax.f32 %v844_v58, %v845_v3  ;;  %v832_v20 = vmax.f32 %v830_v0, %v831_v11  ;;  %v1026_v25 = vadd.f32 %v1025_v18, %v1024_v17  ;;  %v857_v30 = vmax.f32 %v855_v14, %v856_v22 }
 0x22b   : > { %v841_v24 = vmax.f32 %v839_v7, %v840_v16  ;;  %v1041_v31 = vadd.f32 %v1040_v5, %v1039_v23  ;;  %v1281_v33 = vsel %vm898_vm5, 1.0, %v1662_v49  ;;  %v1044_v50 = vsel %vm971_vm8, %v1998_v34, 0.0 }
 0x22c   : > { %v847_v21 = vrot.slane %v846_v13, 2  ;;  %v864_v28 = vsub.f32 0.0, %v832_v20  ;;  %v1028_v35 = vadd.f32 %v1027_v37, %v1026_v25  ;;  %v858_v57 = vrot.slane %v857_v30, 1 }
 0x22d   : > { %v865_v32 = vsub.f32 0.0, %v841_v24  ;;  %v1043_v19 = vadd.f32 %v1042_v6, %v1041_v31  ;;  %v1046_v43 = vsel %vm971_vm8, %v2060_v1, 0.0  ;;  %v1048_v34 = vsel %vm971_vm8, %v2065_v60, 0.0 }
 0x22e   : > { %v848_v29 = vmax.f32 %v846_v13, %v847_v21  ;;  %v943_v36 = vsub.f32 0.75, %v864_v28  ;;  %v959_v40 = vmul.f32 %v864_v28, %v864_v28  ;;  %v859_v46 = vmax.f32 %v857_v30, %v858_v57 }
 0x22f   : > { %v944_v42 = vsub.f32 0.75, %v865_v32  ;;  %v960_v9 = vmul.f32 %v865_v32, %v865_v32  ;;  %v1045_v48 = vadd.f32 %v1044_v50, %v1043_v19  ;;  %v1050_v61 = vsel %vm971_vm8, %v2070_v4, 0.0 }
 0x230   : > { %v849_v41 = vrot.slane %v848_v29, 1  ;;  %v951_v26 = vmax.f32 %v943_v36, 0.0  ;;  %v967_v44 = vmul.f32 %v2006_v38, %v959_v40  ;;  %v867_v27 = vsub.f32 0.0, %v859_v46 }
 0x231   : > { %v952_v49 = vmax.f32 %v944_v42, 0.0  ;;  %v968_v47 = vmul.f32 %v2011_v39, %v960_v9  ;;  %v1047_v59 = vadd.f32 %v1046_v43, %v1045_v48  ;;  %v1052_v16 = vsel %vm971_vm8, %v1281_v33, 0.0 }
 0x232   : > { %v850_v45 = vmax.f32 %v848_v29, %v849_v41  ;;  %v1010_v52 = vmul.f32 %v951_v26, %v951_v26  ;;  %v979_v55 = vsel %vm971_vm8, %v967_v44, 0.0  ;;  %v962_v38 = vmul.f32 %v867_v27, %v867_v27 }
 0x233   : > { %v980_v56 = vadd.f32 %v979_v55, %v978_v2  ;;  %v1011_v58 = vmul.f32 %v952_v49, %v952_v49  ;;  %v946_v0 = vsub.f32 0.75, %v867_v27  ;;  %v981_v39 = vsel %vm971_vm8, %v968_v47, 0.0 }
 0x234   : > { %v866_v53 = vsub.f32 0.0, %v850_v45  ;;  %v1018_v3 = vmul.f32 %v2060_v1, %v1010_v52  ;;  %v1049_v7 = vadd.f32 %v1048_v34, %v1047_v59  ;;  %v970_v2 = vmul.f32 %v2036_v10, %v962_v38 }
 0x235   : > { %v1019_v51 = vmul.f32 %v2065_v60, %v1011_v58  ;;  %v954_v11 = vmax.f32 %v946_v0, 0.0  ;;  %v982_v13 = vadd.f32 %v981_v39, %v980_v56  ;;  %vm1056_vm3 = vcmask 7168  }
 0x236   : > { %v961_v62 = vmul.f32 %v866_v53, %v866_v53  ;;  %v945_v63 = vsub.f32 0.75, %v866_v53  ;;  %v1029_v14 = vsel %vm971_vm8, %v1018_v3, 0.0  ;;  %v1051_v15 = vadd.f32 %v1050_v61, %v1049_v7 }
 0x237   : > { %v1013_v37 = vmul.f32 %v954_v11, %v954_v11  ;;  %v1030_v60 = vadd.f32 %v1029_v14, %v1028_v35  ;;  %v1031_v22 = vsel %vm971_vm8, %v1019_v51, 0.0 }
 0x238   : > { %v969_v12 = vmul.f32 %v2027_v54, %v961_v62  ;;  %v953_v8 = vmax.f32 %v945_v63, 0.0  ;;  %v1053_v20 = vadd.f32 %v1052_v16, %v1051_v15  ;;  %v985_v54 = vsel %vm971_vm8, %v970_v2, 0.0 }
 0x239   : > { %v1021_v21 = vmul.f32 %v1281_v33, %v1013_v37  ;;  %v1032_v24 = vadd.f32 %v1031_v22, %v1030_v60 }
 0x23a   : > { %v983_v17 = vsel %vm971_vm8, %v969_v12, 0.0  ;;  %v1012_v18 = vmul.f32 %v953_v8, %v953_v8  ;;  %1054 = vadd.xlane.f32.xlu2 %v1053_v20 }
 0x23b   : > { %v984_v1 = vadd.f32 %v983_v17, %v982_v13  ;;  %v1035_v6 = vsel %vm971_vm8, %v1021_v21, 0.0 }
 0x23c   : > { %v1020_v10 = vmul.f32 %v2070_v4, %v1012_v18 }
 0x23d   : > { %v986_v23 = vadd.f32 %v985_v54, %v984_v1 }
 0x23e   : > { %v1033_v25 = vsel %vm971_vm8, %v1020_v10, 0.0  ;;  %vm1062_vm8 = vcmask 24576  }
 0x23f   : > { %987 = vadd.xlane.f32.xlu0 %v986_v23  ;;  %v1034_v5 = vadd.f32 %v1033_v25, %v1032_v24 }
 0x241   : > { %v1036_v28 = vadd.f32 %v1035_v6, %v1034_v5 }
 0x243   : > { %1037 = vadd.xlane.f32.xlu1 %v1036_v28 }
 0x298   : > { %v1005_v29 = vpop.xlane.xlu1 %1004 }
 0x2ad   : > { %v1055_v30 = vpop.xlane.xlu2 %1054 }
 0x2b2   : > { %v988_v4 = vpop.xlane.xlu0 %987 }
 0x2b3   : > { %v1057_v31 = vsel %vm1056_vm3, %v988_v4, %v1005_v29 }
 0x2b6   : > { %v1038_v32 = vpop.xlane.xlu1 %1037 }
 0x2b7   : > { %v1059_v33 = vsel %vm1058_vm6, %v1057_v31, %v1038_v32 }
 0x2b8   : > { %v1061_v35 = vsel %vm1060_vm7, %v1059_v33, %v1055_v30 }
 0x2b9   : > { %1063 = vst.msk [vmem:[%s340_s1] sm:$0x1] %vm1062_vm8, %v1061_v35 }
 0x2ba   : > { %1544 = shalt.err (!%p1541_p0)
}
 0x2bb   : > { %1302 = dma.vmem_to_hbm [thread:$0]  (%p1822_p12), %s1078_s8, 16, %s1080_s16, %s1065_s11  }
 0x2bc PF: > { %s2214_s2 = sld [smem:[#allocation14_spill]]  ;;  %p1322_p4 = scmp.ge.s32.totalorder %s1651_s28, 2 }
 0x2be   : > { %p1316_p7 = pnand %p1322_p4, %p1826_p1 }
 0x2c0   : > { %p1317_p9 = pneg %p1316_p7 }
 0x2c2   : > { %s1091_s5 = sand.u32 1, %s2214_s2  }
 0x2c3   : > { %s1092_s24 = scalar_lea.sflag [#allocation5], %s1091_s5 }
 0x2c4   : > { %1606 = dma.done.wait (%p1317_p9), %s1092_s24, 16  }
 0x2c5   : > { %1608 = vsyncadd (%p1317_p9), %s1092_s24, 4294967280  ;;  %s22_s28 = sadd.s32 1, %s1651_s28   ;;  %s2216_s15 = smov %s1839_s18 }
 0x2c6   : > { %p19_p10 = scmp.ge.s32.totalorder %s22_s28, 6   ;;  %s2217_s9 = sld [smem:[#allocation17_spill]] }
 0x2c7   : > { %s2218_s10 = sld [smem:[#allocation18_spill]]  ;;  %s2219_s18 = smov %s1615_s19 }
 0x2c8   : > { %s2220_s19 = smov %s1619_s20  ;;  %s2221_s20 = smov %s2216_s15 }
 0x2c9   : > { %s2222_s21 = smov %s1627_s22  ;;  %s2223_s22 = smov %s1631_s23 }
 0x2ca   : > { %s2224_s23 = smov %s1836_s13  ;;  %s2225_s24 = smov %s1643_s26 }
 0x2cb   : > { %s2226_s25 = smov %s1647_s27  ;;  %21 = sbr.rel (!%p19_p10) target bundleno = 16 (0x10), region = 133 }
 0x2cc   : > { %s2227_s26 = smov %s2217_s9 }
 0x2cd   : > { %s2228_s27 = smov %s2218_s10 }
 0x2d0   :  { %1097 = vsyncpa [#allocation4], 1 }
 0x2d1   :  { %1099 = vsyncpa [#allocation4 + $0x1], 1 }
 0x2d2   :  { %1100 = vsyncpa [#allocation7], 1 }
 0x2d3   :  { %1101 = vsyncpa [#allocation5], 1 }
 0x2d4   :  { %1103 = vsyncpa [#allocation5 + $0x1], 1 }

</bundles_post_ra>
